<compile_context>
chip_gen: v6e
topology: v6e:2x2x1
jax: 0.10.0
libtpu: 0.0.40
codegen_flags: <defaults>
</compile_context>

<pallas_src>
import functools

import jax
import jax.numpy as jnp
from jax.experimental import pallas as pl
from jax.experimental.pallas import tpu as pltpu

LN_EPS = 1e-5  # nn.LayerNorm default

# Row layout of the packed "vecs" operand ([10, 2H]):
_B1, _B2, _B3 = 0, 1, 2
_G1, _BE1, _G2, _BE2, _G3, _BE3 = 3, 4, 5, 6, 7, 8
_B4 = 9
_NUM_VEC_ROWS = 10


def _critic_kernel(state_ref, action_ref, w1s_ref, w1a_ref, w23_ref, w4_ref,
                   vecs_ref, out_ref, *, hidden):
    H = hidden
    vecs = vecs_ref[...]                                 # [10, 2H]
    b1 = vecs[_B1:_B1 + 1, :]
    b2 = vecs[_B2:_B2 + 1, :]
    b3 = vecs[_B3:_B3 + 1, :]
    g1, be1 = vecs[_G1:_G1 + 1, :], vecs[_BE1:_BE1 + 1, :]
    g2, be2 = vecs[_G2:_G2 + 1, :], vecs[_BE2:_BE2 + 1, :]
    g3, be3 = vecs[_G3:_G3 + 1, :], vecs[_BE3:_BE3 + 1, :]
    b4 = vecs[_B4:_B4 + 1, :2]                           # [1, 2]

    def seg_ln_relu(x, gamma, beta):
        # Shared LayerNorm applied independently to each H-wide segment of the
        # fused [B, 2H] activation (biased variance, PyTorch eps), then ReLU.
        def norm(v):
            mu = jnp.mean(v, axis=-1, keepdims=True)
            var = jnp.mean((v - mu) ** 2, axis=-1, keepdims=True)
            return (v - mu) * jax.lax.rsqrt(var + LN_EPS)

        y = jnp.concatenate([norm(x[:, :H]), norm(x[:, H:])], axis=-1)
        return jnp.maximum(y * gamma + beta, 0.0)

    # Layer 1: fused across branches; torch.cat([state, action]) folded into
    # the kernel by splitting W1's rows into state / action blocks.
    h = (jnp.dot(state_ref[...], w1s_ref[...], preferred_element_type=jnp.float32)
         + jnp.dot(action_ref[...], w1a_ref[...], preferred_element_type=jnp.float32)
         + b1)
    h = seg_ln_relu(h, g1, be1)
    # Layers 2/3: block-diagonal fused weights -> one MXU pass each.
    h = jnp.dot(h, w23_ref[0], preferred_element_type=jnp.float32) + b2
    h = seg_ln_relu(h, g2, be2)
    h = jnp.dot(h, w23_ref[1], preferred_element_type=jnp.float32) + b3
    h = seg_ln_relu(h, g3, be3)
    # Fused head: [B, 2H] @ [2H, 2] -> [q1 | q2].
    out_ref[...] = jnp.dot(h, w4_ref[...], preferred_element_type=jnp.float32) + b4


def critic_forward(state, action, packed, *, batch_block=256):
    """Pallas forward of CriticNetwork. Returns (q1, q2), each [B, 1]."""
    state = state.astype(jnp.float32)
    action = action.astype(jnp.float32)
    B, state_dim = state.shape
    action_dim = action.shape[1]
    H2 = packed["vecs"].shape[1]
    hidden = H2 // 2

    # Batch tiling: single block for small B; otherwise 8-aligned tiles
    # (pad batch so the grid divides evenly). Block sizes kept small enough
    # for v7x's 64 MiB VMEM even when double-buffered.
    if B <= batch_block:
        tb, Bp = B, B
    else:
        tb = batch_block
        assert tb % 8 == 0, "batch_block must be a multiple of 8"
        Bp = ((B + tb - 1) // tb) * tb
    if Bp != B:
        pad = Bp - B
        state = jnp.pad(state, ((0, pad), (0, 0)))
        action = jnp.pad(action, ((0, pad), (0, 0)))

    grid = (Bp // tb,)
    w1s, w1a, w23, w4, vecs = (packed["w1s"], packed["w1a"], packed["w23"],
                               packed["w4"], packed["vecs"])

    flops = 2 * Bp * (state_dim * H2 + action_dim * H2 + 2 * H2 * H2 + H2 * 2)
    bytes_accessed = 4 * (state.size + action.size + w1s.size + w1a.size
                          + w23.size + w4.size + vecs.size + Bp * 2)
    cost = pl.CostEstimate(flops=flops, transcendentals=6 * Bp,
                           bytes_accessed=bytes_accessed)

    out = pl.pallas_call(
        functools.partial(_critic_kernel, hidden=hidden),
        grid=grid,
        in_specs=[
            pl.BlockSpec((tb, state_dim), lambda i: (i, 0)),
            pl.BlockSpec((tb, action_dim), lambda i: (i, 0)),
            pl.BlockSpec(w1s.shape, lambda i: (0, 0)),
            pl.BlockSpec(w1a.shape, lambda i: (0, 0)),
            pl.BlockSpec(w23.shape, lambda i: (0, 0, 0)),
            pl.BlockSpec(w4.shape, lambda i: (0, 0)),
            pl.BlockSpec(vecs.shape, lambda i: (0, 0)),
        ],
        out_specs=pl.BlockSpec((tb, 2), lambda i: (i, 0)),
        out_shape=jax.ShapeDtypeStruct((Bp, 2), jnp.float32),
        compiler_params=pltpu.CompilerParams(dimension_semantics=("parallel",)),
        cost_estimate=cost,
    )(state, action, w1s, w1a, w23, w4, vecs)

    q = out[:B]
    return q[:, 0:1], q[:, 1:2]


def init_params(key, state_dim, action_dim, hidden):
    """Synthetic params mirroring CriticNetwork.__init__ shapes.

    Linear weights stored as [in, out] (transposed vs PyTorch's [out, in]);
    biases / LayerNorm params stored as [1, out].
    """
    d_in = state_dim + action_dim
    keys = jax.random.split(key, 16)

    def xavier(k, fan_in, fan_out):
        limit = jnp.sqrt(6.0 / (fan_in + fan_out))
        return jax.random.uniform(k, (fan_in, fan_out), jnp.float32, -limit, limit)

    def default_linear(k, fan_in, fan_out):
        bound = 1.0 / jnp.sqrt(fan_in)
        return jax.random.uniform(k, (fan_in, fan_out), jnp.float32, -bound, bound)

    def bias(k, fan_in, fan_out):
        bound = 1.0 / jnp.sqrt(fan_in)
        return jax.random.uniform(k, (1, fan_out), jnp.float32, -bound, bound)

    return {
        "q1_w1": xavier(keys[0], d_in, hidden),   "q1_b1": bias(keys[1], d_in, hidden),
        "q1_w2": xavier(keys[2], hidden, hidden), "q1_b2": bias(keys[3], hidden, hidden),
        "q1_w3": xavier(keys[4], hidden, hidden), "q1_b3": bias(keys[5], hidden, hidden),
        "q1_w4": default_linear(keys[6], hidden, 1), "q1_b4": bias(keys[7], hidden, 1),
        "q2_w1": xavier(keys[8], d_in, hidden),    "q2_b1": bias(keys[9], d_in, hidden),
        "q2_w2": xavier(keys[10], hidden, hidden), "q2_b2": bias(keys[11], hidden, hidden),
        "q2_w3": xavier(keys[12], hidden, hidden), "q2_b3": bias(keys[13], hidden, hidden),
        "q2_w4": default_linear(keys[14], hidden, 1), "q2_b4": bias(keys[15], hidden, 1),
        "ln1_g": jnp.ones((1, hidden), jnp.float32), "ln1_b": jnp.zeros((1, hidden), jnp.float32),
        "ln2_g": jnp.ones((1, hidden), jnp.float32), "ln2_b": jnp.zeros((1, hidden), jnp.float32),
        "ln3_g": jnp.ones((1, hidden), jnp.float32), "ln3_b": jnp.zeros((1, hidden), jnp.float32),
    }


def pack_params(p, state_dim, action_dim, hidden):
    """One-time repack of per-layer params into 5 fused kernel operands."""
    H = hidden

    def bdiag(a, b):  # [H,H],[H,H] -> block-diagonal [2H,2H]
        z = jnp.zeros((H, H), jnp.float32)
        return jnp.block([[a, z], [z, b]])

    w1 = jnp.concatenate([p["q1_w1"], p["q2_w1"]], axis=1)        # [d_in, 2H]
    w23 = jnp.stack([bdiag(p["q1_w2"], p["q2_w2"]),
                     bdiag(p["q1_w3"], p["q2_w3"])])              # [2, 2H, 2H]
    zH1 = jnp.zeros((H, 1), jnp.float32)
    w4 = jnp.concatenate(
        [jnp.concatenate([p["q1_w4"], zH1], axis=0),
         jnp.concatenate([zH1, p["q2_w4"]], axis=0)], axis=1)      # [2H, 2]

    def tile2(v):  # shared LN param [1,H] -> [1,2H]
        return jnp.concatenate([v, v], axis=1)

    b4_row = jnp.zeros((1, 2 * H), jnp.float32)
    b4_row = b4_row.at[0, 0].set(p["q1_b4"][0, 0]).at[0, 1].set(p["q2_b4"][0, 0])

    vecs = jnp.concatenate([
        jnp.concatenate([p["q1_b1"], p["q2_b1"]], axis=1),        # row 0: b1
        jnp.concatenate([p["q1_b2"], p["q2_b2"]], axis=1),        # row 1: b2
        jnp.concatenate([p["q1_b3"], p["q2_b3"]], axis=1),        # row 2: b3
        tile2(p["ln1_g"]), tile2(p["ln1_b"]),                     # rows 3-4
        tile2(p["ln2_g"]), tile2(p["ln2_b"]),                     # rows 5-6
        tile2(p["ln3_g"]), tile2(p["ln3_b"]),                     # rows 7-8
        b4_row,                                                   # row 9: b4 in lanes 0,1
    ], axis=0)                                                    # [10, 2H]
    assert vecs.shape[0] == _NUM_VEC_ROWS

    return {"w1s": w1[:state_dim], "w1a": w1[state_dim:],
            "w23": w23, "w4": w4, "vecs": vecs}


def reference_forward(state, action, p):
    """Pure-JAX reference matching the PyTorch forward (for sanity check)."""
    sa = jnp.concatenate([state, action], axis=1)

    def ln(x, g, b):
        mu = jnp.mean(x, axis=-1, keepdims=True)
        var = jnp.mean((x - mu) ** 2, axis=-1, keepdims=True)
        return (x - mu) / jnp.sqrt(var + LN_EPS) * g + b

    def branch(prefix):
        h = sa @ p[f"{prefix}_w1"] + p[f"{prefix}_b1"]
        h = jnp.maximum(ln(h, p["ln1_g"], p["ln1_b"]), 0.0)
        h = h @ p[f"{prefix}_w2"] + p[f"{prefix}_b2"]
        h = jnp.maximum(ln(h, p["ln2_g"], p["ln2_b"]), 0.0)
        h = h @ p[f"{prefix}_w3"] + p[f"{prefix}_b3"]
        h = jnp.maximum(ln(h, p["ln3_g"], p["ln3_b"]), 0.0)
        return h @ p[f"{prefix}_w4"] + p[f"{prefix}_b4"]

    return branch("q1"), branch("q2")


if __name__ == "__main__":
    # Small shapes consistent with the module: state_dim=12, action_dim=4, hidden=32.
    STATE_DIM, ACTION_DIM, HIDDEN, BATCH = 12, 4, 32, 8

    key = jax.random.PRNGKey(0)
    k_state, k_action, k_params = jax.random.split(key, 3)

    state = jax.random.normal(k_state, (BATCH, STATE_DIM), jnp.float32)
    action = jax.random.normal(k_action, (BATCH, ACTION_DIM), jnp.float32)
    params = init_params(k_params, STATE_DIM, ACTION_DIM, HIDDEN)
    packed = pack_params(params, STATE_DIM, ACTION_DIM, HIDDEN)   # done once, reused per step

    q1, q2 = critic_forward(state, action, packed)
    jax.block_until_ready((q1, q2))

    # Sanity check against pure-JAX reference of the same math.
    q1_ref, q2_ref = reference_forward(state, action, params)
    assert q1.shape == (BATCH, 1) and q2.shape == (BATCH, 1)
    assert jnp.allclose(q1, q1_ref, atol=1e-4, rtol=1e-4)
    assert jnp.allclose(q2, q2_ref, atol=1e-4, rtol=1e-4)

    print("KERNEL_OK")
</pallas_src>

<mosaic_0001>
module attributes {stable_mosaic.version = 11 : i64} {
  func.func @_critic_kernel(%arg0: i32, %arg1: memref<8x12xf32, #tpu.memory_space<vmem>>, %arg2: memref<8x4xf32, #tpu.memory_space<vmem>>, %arg3: memref<12x64xf32, #tpu.memory_space<vmem>>, %arg4: memref<4x64xf32, #tpu.memory_space<vmem>>, %arg5: memref<2x64x64xf32, #tpu.memory_space<vmem>>, %arg6: memref<64x2xf32, #tpu.memory_space<vmem>>, %arg7: memref<10x64xf32, #tpu.memory_space<vmem>>, %arg8: memref<8x2xf32, #tpu.memory_space<vmem>>) attributes {dimension_semantics = [#tpu.dimension_semantics<parallel>], iteration_bounds = array<i64: 1>, scalar_prefetch = 0 : i64, scratch_operands = 0 : i64, tpu.core_type = #tpu.core_type<tc>, window_params = [{transform_indices = @transform_0, window_bounds = array<i64: 8, 12>}, {transform_indices = @transform_1, window_bounds = array<i64: 8, 4>}, {pipeline_mode = #tpu.pipeline_mode<synchronous>, transform_indices = @transform_2, window_bounds = array<i64: 12, 64>}, {pipeline_mode = #tpu.pipeline_mode<synchronous>, transform_indices = @transform_3, window_bounds = array<i64: 4, 64>}, {pipeline_mode = #tpu.pipeline_mode<synchronous>, transform_indices = @transform_4, window_bounds = array<i64: 2, 64, 64>}, {pipeline_mode = #tpu.pipeline_mode<synchronous>, transform_indices = @transform_5, window_bounds = array<i64: 64, 2>}, {pipeline_mode = #tpu.pipeline_mode<synchronous>, transform_indices = @transform_6, window_bounds = array<i64: 10, 64>}, {transform_indices = @transform_7, window_bounds = array<i64: 8, 2>}]} {
    %c0 = arith.constant 0 : index
    %c0_0 = arith.constant 0 : index
    %0 = vector.load %arg7[%c0, %c0_0] : memref<10x64xf32, #tpu.memory_space<vmem>>, vector<10x64xf32>
    %1 = vector.extract_strided_slice %0 {offsets = [0, 0], sizes = [1, 64], strides = [1, 1]} : vector<10x64xf32> to vector<1x64xf32>
    %2 = vector.extract_strided_slice %0 {offsets = [1, 0], sizes = [1, 64], strides = [1, 1]} : vector<10x64xf32> to vector<1x64xf32>
    %3 = vector.extract_strided_slice %0 {offsets = [2, 0], sizes = [1, 64], strides = [1, 1]} : vector<10x64xf32> to vector<1x64xf32>
    %4 = vector.extract_strided_slice %0 {offsets = [3, 0], sizes = [1, 64], strides = [1, 1]} : vector<10x64xf32> to vector<1x64xf32>
    %5 = vector.extract_strided_slice %0 {offsets = [4, 0], sizes = [1, 64], strides = [1, 1]} : vector<10x64xf32> to vector<1x64xf32>
    %6 = vector.extract_strided_slice %0 {offsets = [5, 0], sizes = [1, 64], strides = [1, 1]} : vector<10x64xf32> to vector<1x64xf32>
    %7 = vector.extract_strided_slice %0 {offsets = [6, 0], sizes = [1, 64], strides = [1, 1]} : vector<10x64xf32> to vector<1x64xf32>
    %8 = vector.extract_strided_slice %0 {offsets = [7, 0], sizes = [1, 64], strides = [1, 1]} : vector<10x64xf32> to vector<1x64xf32>
    %9 = vector.extract_strided_slice %0 {offsets = [8, 0], sizes = [1, 64], strides = [1, 1]} : vector<10x64xf32> to vector<1x64xf32>
    %10 = vector.extract_strided_slice %0 {offsets = [9, 0], sizes = [1, 2], strides = [1, 1]} : vector<10x64xf32> to vector<1x2xf32>
    %c0_1 = arith.constant 0 : index
    %c0_2 = arith.constant 0 : index
    %11 = vector.load %arg1[%c0_1, %c0_2] : memref<8x12xf32, #tpu.memory_space<vmem>>, vector<8x12xf32>
    %c0_3 = arith.constant 0 : index
    %c0_4 = arith.constant 0 : index
    %12 = vector.load %arg3[%c0_3, %c0_4] : memref<12x64xf32, #tpu.memory_space<vmem>>, vector<12x64xf32>
    %cst = arith.constant dense<0.000000e+00> : vector<8x64xf32>
    %13 = tpu.matmul %11, %12, %cst {dimension_numbers = #tpu.dot_dimension_numbers<[1], [0], [0], [1], [0, 0, 1, 1], [], []>} : vector<8x12xf32>, vector<12x64xf32>, vector<8x64xf32> -> vector<8x64xf32>
    %c0_5 = arith.constant 0 : index
    %c0_6 = arith.constant 0 : index
    %14 = vector.load %arg2[%c0_5, %c0_6] : memref<8x4xf32, #tpu.memory_space<vmem>>, vector<8x4xf32>
    %c0_7 = arith.constant 0 : index
    %c0_8 = arith.constant 0 : index
    %15 = vector.load %arg4[%c0_7, %c0_8] : memref<4x64xf32, #tpu.memory_space<vmem>>, vector<4x64xf32>
    %cst_9 = arith.constant dense<0.000000e+00> : vector<8x64xf32>
    %16 = tpu.matmul %14, %15, %cst_9 {dimension_numbers = #tpu.dot_dimension_numbers<[1], [0], [0], [1], [0, 0, 1, 1], [], []>} : vector<8x4xf32>, vector<4x64xf32>, vector<8x64xf32> -> vector<8x64xf32>
    %17 = arith.addf %13, %16 : vector<8x64xf32>
    %18 = vector.broadcast %1 : vector<1x64xf32> to vector<8x64xf32>
    %19 = arith.addf %17, %18 : vector<8x64xf32>
    %20 = vector.extract_strided_slice %19 {offsets = [0, 0], sizes = [8, 32], strides = [1, 1]} : vector<8x64xf32> to vector<8x32xf32>
    %cst_10 = arith.constant dense<0.000000e+00> : vector<8xf32>
    %21 = vector.multi_reduction <add>, %20, %cst_10 [1] : vector<8x32xf32> to vector<8xf32>
    %22 = vector.shape_cast %21 : vector<8xf32> to vector<8x1xf32>
    %cst_11 = arith.constant 3.200000e+01 : f32
    %23 = vector.broadcast %cst_11 : f32 to vector<8x1xf32>
    %24 = arith.divf %22, %23 : vector<8x1xf32>
    %25 = vector.broadcast %24 : vector<8x1xf32> to vector<8x32xf32>
    %26 = arith.subf %20, %25 : vector<8x32xf32>
    %27 = arith.mulf %26, %26 : vector<8x32xf32>
    %cst_12 = arith.constant dense<0.000000e+00> : vector<8xf32>
    %28 = vector.multi_reduction <add>, %27, %cst_12 [1] : vector<8x32xf32> to vector<8xf32>
    %29 = vector.shape_cast %28 : vector<8xf32> to vector<8x1xf32>
    %cst_13 = arith.constant 3.200000e+01 : f32
    %30 = vector.broadcast %cst_13 : f32 to vector<8x1xf32>
    %31 = arith.divf %29, %30 : vector<8x1xf32>
    %32 = vector.broadcast %24 : vector<8x1xf32> to vector<8x32xf32>
    %33 = arith.subf %20, %32 : vector<8x32xf32>
    %cst_14 = arith.constant 9.99999974E-6 : f32
    %34 = vector.broadcast %cst_14 : f32 to vector<8x1xf32>
    %35 = arith.addf %31, %34 : vector<8x1xf32>
    %36 = math.rsqrt %35 : vector<8x1xf32>
    %37 = vector.broadcast %36 : vector<8x1xf32> to vector<8x32xf32>
    %38 = arith.mulf %33, %37 : vector<8x32xf32>
    %39 = vector.extract_strided_slice %19 {offsets = [0, 32], sizes = [8, 32], strides = [1, 1]} : vector<8x64xf32> to vector<8x32xf32>
    %cst_15 = arith.constant dense<0.000000e+00> : vector<8xf32>
    %40 = vector.multi_reduction <add>, %39, %cst_15 [1] : vector<8x32xf32> to vector<8xf32>
    %41 = vector.shape_cast %40 : vector<8xf32> to vector<8x1xf32>
    %cst_16 = arith.constant 3.200000e+01 : f32
    %42 = vector.broadcast %cst_16 : f32 to vector<8x1xf32>
    %43 = arith.divf %41, %42 : vector<8x1xf32>
    %44 = vector.broadcast %43 : vector<8x1xf32> to vector<8x32xf32>
    %45 = arith.subf %39, %44 : vector<8x32xf32>
    %46 = arith.mulf %45, %45 : vector<8x32xf32>
    %cst_17 = arith.constant dense<0.000000e+00> : vector<8xf32>
    %47 = vector.multi_reduction <add>, %46, %cst_17 [1] : vector<8x32xf32> to vector<8xf32>
    %48 = vector.shape_cast %47 : vector<8xf32> to vector<8x1xf32>
    %cst_18 = arith.constant 3.200000e+01 : f32
    %49 = vector.broadcast %cst_18 : f32 to vector<8x1xf32>
    %50 = arith.divf %48, %49 : vector<8x1xf32>
    %51 = vector.broadcast %43 : vector<8x1xf32> to vector<8x32xf32>
    %52 = arith.subf %39, %51 : vector<8x32xf32>
    %cst_19 = arith.constant 9.99999974E-6 : f32
    %53 = vector.broadcast %cst_19 : f32 to vector<8x1xf32>
    %54 = arith.addf %50, %53 : vector<8x1xf32>
    %55 = math.rsqrt %54 : vector<8x1xf32>
    %56 = vector.broadcast %55 : vector<8x1xf32> to vector<8x32xf32>
    %57 = arith.mulf %52, %56 : vector<8x32xf32>
    %58 = tpu.concatenate %38, %57 in 1 : vector<8x32xf32>, vector<8x32xf32> -> vector<8x64xf32>
    %59 = vector.broadcast %4 : vector<1x64xf32> to vector<8x64xf32>
    %60 = arith.mulf %58, %59 : vector<8x64xf32>
    %61 = vector.broadcast %5 : vector<1x64xf32> to vector<8x64xf32>
    %62 = arith.addf %60, %61 : vector<8x64xf32>
    %cst_20 = arith.constant 0.000000e+00 : f32
    %63 = vector.broadcast %cst_20 : f32 to vector<8x64xf32>
    %64 = arith.maximumf %62, %63 : vector<8x64xf32>
    %c0_21 = arith.constant 0 : index
    %c0_22 = arith.constant 0 : index
    %c0_23 = arith.constant 0 : index
    %65 = vector.load %arg5[%c0_21, %c0_22, %c0_23] : memref<2x64x64xf32, #tpu.memory_space<vmem>>, vector<1x64x64xf32>
    %66 = vector.shape_cast %65 : vector<1x64x64xf32> to vector<64x64xf32>
    %cst_24 = arith.constant dense<0.000000e+00> : vector<8x64xf32>
    %67 = tpu.matmul %64, %66, %cst_24 {dimension_numbers = #tpu.dot_dimension_numbers<[1], [0], [0], [1], [0, 0, 1, 1], [], []>} : vector<8x64xf32>, vector<64x64xf32>, vector<8x64xf32> -> vector<8x64xf32>
    %68 = vector.broadcast %2 : vector<1x64xf32> to vector<8x64xf32>
    %69 = arith.addf %67, %68 : vector<8x64xf32>
    %70 = vector.extract_strided_slice %69 {offsets = [0, 0], sizes = [8, 32], strides = [1, 1]} : vector<8x64xf32> to vector<8x32xf32>
    %cst_25 = arith.constant dense<0.000000e+00> : vector<8xf32>
    %71 = vector.multi_reduction <add>, %70, %cst_25 [1] : vector<8x32xf32> to vector<8xf32>
    %72 = vector.shape_cast %71 : vector<8xf32> to vector<8x1xf32>
    %cst_26 = arith.constant 3.200000e+01 : f32
    %73 = vector.broadcast %cst_26 : f32 to vector<8x1xf32>
    %74 = arith.divf %72, %73 : vector<8x1xf32>
    %75 = vector.broadcast %74 : vector<8x1xf32> to vector<8x32xf32>
    %76 = arith.subf %70, %75 : vector<8x32xf32>
    %77 = arith.mulf %76, %76 : vector<8x32xf32>
    %cst_27 = arith.constant dense<0.000000e+00> : vector<8xf32>
    %78 = vector.multi_reduction <add>, %77, %cst_27 [1] : vector<8x32xf32> to vector<8xf32>
    %79 = vector.shape_cast %78 : vector<8xf32> to vector<8x1xf32>
    %cst_28 = arith.constant 3.200000e+01 : f32
    %80 = vector.broadcast %cst_28 : f32 to vector<8x1xf32>
    %81 = arith.divf %79, %80 : vector<8x1xf32>
    %82 = vector.broadcast %74 : vector<8x1xf32> to vector<8x32xf32>
    %83 = arith.subf %70, %82 : vector<8x32xf32>
    %cst_29 = arith.constant 9.99999974E-6 : f32
    %84 = vector.broadcast %cst_29 : f32 to vector<8x1xf32>
    %85 = arith.addf %81, %84 : vector<8x1xf32>
    %86 = math.rsqrt %85 : vector<8x1xf32>
    %87 = vector.broadcast %86 : vector<8x1xf32> to vector<8x32xf32>
    %88 = arith.mulf %83, %87 : vector<8x32xf32>
    %89 = vector.extract_strided_slice %69 {offsets = [0, 32], sizes = [8, 32], strides = [1, 1]} : vector<8x64xf32> to vector<8x32xf32>
    %cst_30 = arith.constant dense<0.000000e+00> : vector<8xf32>
    %90 = vector.multi_reduction <add>, %89, %cst_30 [1] : vector<8x32xf32> to vector<8xf32>
    %91 = vector.shape_cast %90 : vector<8xf32> to vector<8x1xf32>
    %cst_31 = arith.constant 3.200000e+01 : f32
    %92 = vector.broadcast %cst_31 : f32 to vector<8x1xf32>
    %93 = arith.divf %91, %92 : vector<8x1xf32>
    %94 = vector.broadcast %93 : vector<8x1xf32> to vector<8x32xf32>
    %95 = arith.subf %89, %94 : vector<8x32xf32>
    %96 = arith.mulf %95, %95 : vector<8x32xf32>
    %cst_32 = arith.constant dense<0.000000e+00> : vector<8xf32>
    %97 = vector.multi_reduction <add>, %96, %cst_32 [1] : vector<8x32xf32> to vector<8xf32>
    %98 = vector.shape_cast %97 : vector<8xf32> to vector<8x1xf32>
    %cst_33 = arith.constant 3.200000e+01 : f32
    %99 = vector.broadcast %cst_33 : f32 to vector<8x1xf32>
    %100 = arith.divf %98, %99 : vector<8x1xf32>
    %101 = vector.broadcast %93 : vector<8x1xf32> to vector<8x32xf32>
    %102 = arith.subf %89, %101 : vector<8x32xf32>
    %cst_34 = arith.constant 9.99999974E-6 : f32
    %103 = vector.broadcast %cst_34 : f32 to vector<8x1xf32>
    %104 = arith.addf %100, %103 : vector<8x1xf32>
    %105 = math.rsqrt %104 : vector<8x1xf32>
    %106 = vector.broadcast %105 : vector<8x1xf32> to vector<8x32xf32>
    %107 = arith.mulf %102, %106 : vector<8x32xf32>
    %108 = tpu.concatenate %88, %107 in 1 : vector<8x32xf32>, vector<8x32xf32> -> vector<8x64xf32>
    %109 = vector.broadcast %6 : vector<1x64xf32> to vector<8x64xf32>
    %110 = arith.mulf %108, %109 : vector<8x64xf32>
    %111 = vector.broadcast %7 : vector<1x64xf32> to vector<8x64xf32>
    %112 = arith.addf %110, %111 : vector<8x64xf32>
    %cst_35 = arith.constant 0.000000e+00 : f32
    %113 = vector.broadcast %cst_35 : f32 to vector<8x64xf32>
    %114 = arith.maximumf %112, %113 : vector<8x64xf32>
    %c1 = arith.constant 1 : index
    %c0_36 = arith.constant 0 : index
    %c0_37 = arith.constant 0 : index
    %115 = vector.load %arg5[%c1, %c0_36, %c0_37] : memref<2x64x64xf32, #tpu.memory_space<vmem>>, vector<1x64x64xf32>
    %116 = vector.shape_cast %115 : vector<1x64x64xf32> to vector<64x64xf32>
    %cst_38 = arith.constant dense<0.000000e+00> : vector<8x64xf32>
    %117 = tpu.matmul %114, %116, %cst_38 {dimension_numbers = #tpu.dot_dimension_numbers<[1], [0], [0], [1], [0, 0, 1, 1], [], []>} : vector<8x64xf32>, vector<64x64xf32>, vector<8x64xf32> -> vector<8x64xf32>
    %118 = vector.broadcast %3 : vector<1x64xf32> to vector<8x64xf32>
    %119 = arith.addf %117, %118 : vector<8x64xf32>
    %120 = vector.extract_strided_slice %119 {offsets = [0, 0], sizes = [8, 32], strides = [1, 1]} : vector<8x64xf32> to vector<8x32xf32>
    %cst_39 = arith.constant dense<0.000000e+00> : vector<8xf32>
    %121 = vector.multi_reduction <add>, %120, %cst_39 [1] : vector<8x32xf32> to vector<8xf32>
    %122 = vector.shape_cast %121 : vector<8xf32> to vector<8x1xf32>
    %cst_40 = arith.constant 3.200000e+01 : f32
    %123 = vector.broadcast %cst_40 : f32 to vector<8x1xf32>
    %124 = arith.divf %122, %123 : vector<8x1xf32>
    %125 = vector.broadcast %124 : vector<8x1xf32> to vector<8x32xf32>
    %126 = arith.subf %120, %125 : vector<8x32xf32>
    %127 = arith.mulf %126, %126 : vector<8x32xf32>
    %cst_41 = arith.constant dense<0.000000e+00> : vector<8xf32>
    %128 = vector.multi_reduction <add>, %127, %cst_41 [1] : vector<8x32xf32> to vector<8xf32>
    %129 = vector.shape_cast %128 : vector<8xf32> to vector<8x1xf32>
    %cst_42 = arith.constant 3.200000e+01 : f32
    %130 = vector.broadcast %cst_42 : f32 to vector<8x1xf32>
    %131 = arith.divf %129, %130 : vector<8x1xf32>
    %132 = vector.broadcast %124 : vector<8x1xf32> to vector<8x32xf32>
    %133 = arith.subf %120, %132 : vector<8x32xf32>
    %cst_43 = arith.constant 9.99999974E-6 : f32
    %134 = vector.broadcast %cst_43 : f32 to vector<8x1xf32>
    %135 = arith.addf %131, %134 : vector<8x1xf32>
    %136 = math.rsqrt %135 : vector<8x1xf32>
    %137 = vector.broadcast %136 : vector<8x1xf32> to vector<8x32xf32>
    %138 = arith.mulf %133, %137 : vector<8x32xf32>
    %139 = vector.extract_strided_slice %119 {offsets = [0, 32], sizes = [8, 32], strides = [1, 1]} : vector<8x64xf32> to vector<8x32xf32>
    %cst_44 = arith.constant dense<0.000000e+00> : vector<8xf32>
    %140 = vector.multi_reduction <add>, %139, %cst_44 [1] : vector<8x32xf32> to vector<8xf32>
    %141 = vector.shape_cast %140 : vector<8xf32> to vector<8x1xf32>
    %cst_45 = arith.constant 3.200000e+01 : f32
    %142 = vector.broadcast %cst_45 : f32 to vector<8x1xf32>
    %143 = arith.divf %141, %142 : vector<8x1xf32>
    %144 = vector.broadcast %143 : vector<8x1xf32> to vector<8x32xf32>
    %145 = arith.subf %139, %144 : vector<8x32xf32>
    %146 = arith.mulf %145, %145 : vector<8x32xf32>
    %cst_46 = arith.constant dense<0.000000e+00> : vector<8xf32>
    %147 = vector.multi_reduction <add>, %146, %cst_46 [1] : vector<8x32xf32> to vector<8xf32>
    %148 = vector.shape_cast %147 : vector<8xf32> to vector<8x1xf32>
    %cst_47 = arith.constant 3.200000e+01 : f32
    %149 = vector.broadcast %cst_47 : f32 to vector<8x1xf32>
    %150 = arith.divf %148, %149 : vector<8x1xf32>
    %151 = vector.broadcast %143 : vector<8x1xf32> to vector<8x32xf32>
    %152 = arith.subf %139, %151 : vector<8x32xf32>
    %cst_48 = arith.constant 9.99999974E-6 : f32
    %153 = vector.broadcast %cst_48 : f32 to vector<8x1xf32>
    %154 = arith.addf %150, %153 : vector<8x1xf32>
    %155 = math.rsqrt %154 : vector<8x1xf32>
    %156 = vector.broadcast %155 : vector<8x1xf32> to vector<8x32xf32>
    %157 = arith.mulf %152, %156 : vector<8x32xf32>
    %158 = tpu.concatenate %138, %157 in 1 : vector<8x32xf32>, vector<8x32xf32> -> vector<8x64xf32>
    %159 = vector.broadcast %8 : vector<1x64xf32> to vector<8x64xf32>
    %160 = arith.mulf %158, %159 : vector<8x64xf32>
    %161 = vector.broadcast %9 : vector<1x64xf32> to vector<8x64xf32>
    %162 = arith.addf %160, %161 : vector<8x64xf32>
    %cst_49 = arith.constant 0.000000e+00 : f32
    %163 = vector.broadcast %cst_49 : f32 to vector<8x64xf32>
    %164 = arith.maximumf %162, %163 : vector<8x64xf32>
    %c0_50 = arith.constant 0 : index
    %c0_51 = arith.constant 0 : index
    %165 = vector.load %arg6[%c0_50, %c0_51] : memref<64x2xf32, #tpu.memory_space<vmem>>, vector<64x2xf32>
    %cst_52 = arith.constant dense<0.000000e+00> : vector<8x2xf32>
    %166 = tpu.matmul %164, %165, %cst_52 {dimension_numbers = #tpu.dot_dimension_numbers<[1], [0], [0], [1], [0, 0, 1, 1], [], []>} : vector<8x64xf32>, vector<64x2xf32>, vector<8x2xf32> -> vector<8x2xf32>
    %167 = vector.broadcast %10 : vector<1x2xf32> to vector<8x2xf32>
    %168 = arith.addf %166, %167 : vector<8x2xf32>
    %c0_53 = arith.constant 0 : index
    %c0_54 = arith.constant 0 : index
    %169 = vector.load %arg8[%c0_53, %c0_54] : memref<8x2xf32, #tpu.memory_space<vmem>>, vector<8x2xf32>
    tpu.vector_store %arg8[%c0_53, %c0_54], %168 {strides = array<i32>} : memref<8x2xf32, #tpu.memory_space<vmem>>, vector<8x2xf32>,
    return
  }
  func.func @transform_0(%arg0: i32) -> (i32, i32) {
    %c0_i32 = arith.constant 0 : i32
    %c0_i32_0 = arith.constant 0 : i32
    return %arg0, %c0_i32 : i32, i32
  }
  func.func @transform_1(%arg0: i32) -> (i32, i32) {
    %c0_i32 = arith.constant 0 : i32
    %c0_i32_0 = arith.constant 0 : i32
    return %arg0, %c0_i32 : i32, i32
  }
  func.func @transform_2(%arg0: i32) -> (i32, i32) {
    %c0_i32 = arith.constant 0 : i32
    %c0_i32_0 = arith.constant 0 : i32
    %c0_i32_1 = arith.constant 0 : i32
    return %c0_i32, %c0_i32_0 : i32, i32
  }
  func.func @transform_3(%arg0: i32) -> (i32, i32) {
    %c0_i32 = arith.constant 0 : i32
    %c0_i32_0 = arith.constant 0 : i32
    %c0_i32_1 = arith.constant 0 : i32
    return %c0_i32, %c0_i32_0 : i32, i32
  }
  func.func @transform_4(%arg0: i32) -> (i32, i32, i32) {
    %c0_i32 = arith.constant 0 : i32
    %c0_i32_0 = arith.constant 0 : i32
    %c0_i32_1 = arith.constant 0 : i32
    %c0_i32_2 = arith.constant 0 : i32
    return %c0_i32, %c0_i32_0, %c0_i32_1 : i32, i32, i32
  }
  func.func @transform_5(%arg0: i32) -> (i32, i32) {
    %c0_i32 = arith.constant 0 : i32
    %c0_i32_0 = arith.constant 0 : i32
    %c0_i32_1 = arith.constant 0 : i32
    return %c0_i32, %c0_i32_0 : i32, i32
  }
  func.func @transform_6(%arg0: i32) -> (i32, i32) {
    %c0_i32 = arith.constant 0 : i32
    %c0_i32_0 = arith.constant 0 : i32
    %c0_i32_1 = arith.constant 0 : i32
    return %c0_i32, %c0_i32_0 : i32, i32
  }
  func.func @transform_7(%arg0: i32) -> (i32, i32) {
    %c0_i32 = arith.constant 0 : i32
    %c0_i32_0 = arith.constant 0 : i32
    return %arg0, %c0_i32 : i32, i32
  }
}

</mosaic_0001>

<bundles_post_ra>
// kernel: tpu_custom_call.1
= control target key start
LH: loop header
LB: loop body
LE: loop exit
PB: predicated region body
PF: predicated region fallthrough
CT: control target
= control target key end

     0   :  { %12 = vsyncpa [#allocation3], 0  ;;  %s759_s24 = smov [#allocation2]   ;;  %s945_s0 = inlined_call_operand.vmem [shape: f32[8,12], index: 0, kind: input, shape index: {}]   ;;  %s946_s1 = inlined_call_operand.vmem [shape: f32[8,4], index: 1, kind: input, shape index: {}]   ;;  %s947_s2 = inlined_call_operand.vmem [shape: f32[12,64], index: 2, kind: input, shape index: {}]   ;;  %s948_s3 = inlined_call_operand.vmem [shape: f32[4,64], index: 3, kind: input, shape index: {}]   ;;  %s949_s4 = inlined_call_operand.hbm [shape: f32[2,64,64], index: 4, kind: input, shape index: {}]   ;;  %s950_s5 = inlined_call_operand.vmem [shape: f32[64,2], index: 5, kind: input, shape index: {}]   ;;  %s951_s6 = inlined_call_operand.vmem [shape: f32[10,64], index: 6, kind: input, shape index: {}]   ;;  %s952_s7 = inlined_call_operand.vmem [shape: f32[8,2], index: 7, kind: output, shape index: {}]  }
   0x1   :  { %s26_s25 = sshll.u32 %s759_s24, 4  ;;  %s27_s25 = int_to_ptr.vmem [resolvable:$true] %s26_s25 }
   0x2   :  { %s745_s26 = scalar_lea.vmem %s27_s25, 2048  ;;  %p750_p1 = scmp.lt.s32.totalorder %s27_s25, %s27_s25 }
   0x3   :  { %p746_p0 = scmp.ne.s32.totalorder %s27_s25, %s745_s26  ;;  %p751_p2 = scmp.lt.s32.totalorder %s745_s26, %s745_s26 }
   0x5   :  { %p752_p3 = por %p751_p2, %p750_p1 }
   0x7   :  { %p753_p4 = pnand %p752_p3, %p746_p0 }
   0x9   :  { %756 = shalt.err (!%p753_p4)
}
   0xa   :  { %s760_s27 = smov 128   ;;  %s761_s28 = smov 8  }
   0xb   :  { %32 = dma.hbm_to_vmem [thread:$0]  %s949_s4, 2048, %s27_s25, [#allocation3], %s760_s27, %s760_s27, %s761_s28  }
   0xc   :  { %757 = dma.done.wait [#allocation3], 2048  }
   0xd   :  { %758 = vsyncadd [#allocation3], 4294965248  ;;  %v762_v0 = vmov 0.0   ;;  %vm763_vm0 = vmmov 0   ;;  %vm51_vm1 = vcmask 1043456   ;;  %vm47_vm2 = vcmask 31744  }
   0xe   :  { %650 = vmatprep.subr.mxu1 %v762_v0  ;;  %652 = vmatprep.mubr.msk.f32.mxu1 %vm763_vm0, %v762_v0  ;;  %v46_v1 = vld [vmem:[%s948_s3] sm:$0xf]  ;;  %v44_v3 = vld [vmem:[%s947_s2 + $0x8] sm:$0xf]  ;;  %vm125_vm3 = vcmask 97280   ;;  %v202_v6 = vlaneseq  ;;  %vm207_vm4 = vcmask 261120  }
   0xf   :  { %662 = vmatprep.subr.mxu0 %v762_v0  ;;  %678 = vmatprep.mubr.msk.f32.mxu0 %vm763_vm0, %v762_v0  ;;  %v45_v2 = vld [vmem:[%s946_s1] sm:$0xff]  ;;  %v262_v31 = vld [vmem:[#allocation2 + $0x38] sm:$0xff]  ;;  %v261_v32 = vld [vmem:[#allocation2 + $0x30] sm:$0xff]  ;;  %vm267_vm5 = vcmask 523264   ;;  %vm604_vm6 = vcmask 15360  }
  0x10   :  { %651 = vmatpush3.msk.msra.mxu1 %vm51_vm1, %v46_v1  ;;  %v43_v4 = vld [vmem:[%s947_s2] sm:$0xff]  ;;  %v836_v7 = vshrl.u32 %v202_v6, 7  ;;  %663 = vmatpush3.msra.mxu0 %v262_v31  ;;  %v260_v33 = vld [vmem:[#allocation2 + $0x28] sm:$0xff]  ;;  %v258_v35 = vld [vmem:[#allocation2 + $0x18] sm:$0xff] }
  0x11   :  { %653 = vmatmul.mubr.msk.f32.vlgmr.msra.gmra.mxu1 %vm47_vm2, %v45_v2  ;;  %655 = vmatprep.subr.mxu1 %v762_v0  ;;  %v42_v5 = vld [vmem:[%s945_s0] sm:$0xff]  ;;  %s764_s0 = smov 96   ;;  %v257_v36 = vld [vmem:[#allocation2 + $0x10] sm:$0xff]  ;;  %v256_v37 = vld [vmem:[#allocation2 + $0x8] sm:$0xff] }
  0x12   :  { %656 = vmatpush3.msk.msra.mxu1 %vm51_vm1, %v44_v3  ;;  %659 = vmatprep.mubr.msk.f32.mxu1 %vm763_vm0, %v762_v0  ;;  %v204_v8 = vsub.s32 0, %v836_v7  ;;  %v842_v10 = vld [vmem:[%s951_s6] sm:$0xff]  ;;  %v246_v45 = vsub.s32 3, %v836_v7  ;;  %v251_v47 = vsub.s32 4, %v836_v7  ;;  %v265_v57 = vsub.s32 1, %v836_v7 }
  0x13   :  { %657 = vmatprep.subr.mxu1 %v762_v0  ;;  %664 = vmatprep.subr.mxu0 %v762_v0  ;;  %v259_v34 = vld [vmem:[#allocation2 + $0x20] sm:$0xff] }
  0x14   :  { %658 = vmatpush3.msra.mxu1 %v43_v4  ;;  %v205_v12 = vrot.slane %v842_v10, %v204_v8  ;;  %665 = vmatpush3.msra.mxu0 %v261_v32  ;;  %v255_v38 = vld [vmem:[#allocation2] sm:$0xff]  ;;  %v247_v49 = vrot.slane %v842_v10, %v246_v45  ;;  %v252_v52 = vrot.slane %v842_v10, %v251_v47  ;;  %v383_v32 = vsub.s32 6, %v836_v7 }
  0x15   :  { %660 = vmatmul.mubr.msk.f32.vlgmr.msra.gmra.mxu1 %vm125_vm3, %v42_v5  ;;  %681 = vmatprep.subr.mxu1 %v762_v0  ;;  %v266_v58 = vrot.slane %v842_v10, %v265_v57 }
  0x16   :  { %697 = vmatprep.mubr.msk.f32.mxu1 %vm763_vm0, %v762_v0  ;;  %666 = vmatprep.subr.mxu0 %v762_v0 }
  0x17   :  { %667 = vmatpush3.msra.mxu0 %v260_v33 }
  0x18   :  { %668 = vmatprep.subr.mxu0 %v762_v0 }
  0x19   :  { %669 = vmatpush3.msra.mxu0 %v259_v34 }
  0x1a   :  { %670 = vmatprep.subr.mxu0 %v762_v0 }
  0x1b   :  { %671 = vmatpush3.msra.mxu0 %v258_v35 }
  0x1c   :  { %672 = vmatprep.subr.mxu0 %v762_v0 }
  0x1d   :  { %673 = vmatpush3.msra.mxu0 %v257_v36 }
  0x1e   :  { %674 = vmatprep.subr.mxu0 %v762_v0 }
  0x1f   :  { %675 = vmatpush3.msra.mxu0 %v256_v37  ;;  %v384_v37 = vrot.slane %v842_v10, %v383_v32 }
  0x20   :  { %676 = vmatprep.subr.mxu0 %v762_v0 }
  0x21   :  { %677 = vmatpush3.msra.mxu0 %v255_v38 }
  0x22   :  { %700 = vmatprep.subr.mxu0 %v762_v0 }
  0xd1   :  { %v121_v9 = vpop.f32.mrf.mxu1 }
  0xd3   :  { %v654_v11 = vpop.f32.mrf.mxu1 }
  0xd5   :  { %v198_v13 = vpop.f32.mrf.mxu1 }
  0xd6   :  { %v199_v14 = vadd.f32 %v198_v13, %v121_v9 }
  0xd7   :  { %v661_v15 = vpop.f32.mrf.mxu1 }
  0xd8   :  { %v206_v16 = vadd.f32 %v205_v12, %v199_v14 }
  0xda   :  { %223 = vrot.lane.b32.xlu0 %v206_v16, %s764_s0  ;;  %v208_v17 = vsel %vm207_vm4, %v206_v16, 0.0 }
  0xdb   :  { %209 = vadd.xlane.f32.xlu1 %v208_v17  ;;  %v394_v17 = vld [vmem:[#allocation2 + $0x70] sm:$0xff] }
 0x14c   :  { %v224_v18 = vpop.permute.xlu0 %223 }
 0x14d   :  { %v226_v19 = vsel %vm207_vm4, %v224_v18, 0.0  ;;  %v393_v18 = vld [vmem:[#allocation2 + $0x68] sm:$0xff] }
 0x14e   :  { %227 = vadd.xlane.f32.xlu0 %v226_v19  ;;  %v392_v19 = vld [vmem:[#allocation2 + $0x60] sm:$0xff] }
 0x164   :  { %v210_v24 = vpop.xlane.xlu1 %209 }
 0x165   :  { %v212_v25 = vmul.f32 0.03125, %v210_v24 }
 0x167   :  { %v213_v26 = vsub.f32 %v206_v16, %v212_v25 }
 0x169   :  { %v214_v27 = vmul.f32 %v213_v26, %v213_v26 }
 0x16b   :  { %v215_v28 = vsel %vm207_vm4, %v214_v27, 0.0 }
 0x1d7   :  { %v228_v20 = vpop.xlane.xlu0 %227 }
 0x1d8   :  { %v229_v21 = vmul.f32 0.03125, %v228_v20  ;;  %v391_v20 = vld [vmem:[#allocation2 + $0x58] sm:$0xff] }
 0x1da   :  { %v230_v22 = vsub.f32 %v206_v16, %v229_v21  ;;  %v395_v16 = vld [vmem:[#allocation2 + $0x78] sm:$0xff]  ;;  %v390_v21 = vld [vmem:[#allocation2 + $0x50] sm:$0xff] }
 0x1db   :  { %682 = vmatpush3.msra.mxu1 %v395_v16  ;;  %v510_v16 = vsub.s32 7, %v836_v7 }
 0x1dc   :  { %v231_v23 = vmul.f32 %v230_v22, %v230_v22  ;;  %683 = vmatprep.subr.mxu1 %v762_v0 }
 0x1dd   :  { %684 = vmatpush3.msra.mxu1 %v394_v17 }
 0x1de   :  { %233 = vrot.lane.b32.xlu1 %v231_v23, %s764_s0  ;;  %685 = vmatprep.subr.mxu1 %v762_v0  ;;  %v388_v23 = vld [vmem:[#allocation2 + $0x40] sm:$0xff] }
 0x1df   :  { %686 = vmatpush3.msra.mxu1 %v393_v18  ;;  %v41_v18 = vld [vmem:[%s951_s6 + $0x8] sm:$0x3] }
 0x1e0   :  { %687 = vmatprep.subr.mxu1 %v762_v0 }
 0x1e1   :  { %688 = vmatpush3.msra.mxu1 %v392_v19 }
 0x1e2   :  { %689 = vmatprep.subr.mxu1 %v762_v0 }
 0x1e3   :  { %690 = vmatpush3.msra.mxu1 %v391_v20  ;;  %v511_v20 = vrot.slane %v842_v10, %v510_v16 }
 0x1e4   :  { %691 = vmatprep.subr.mxu1 %v762_v0 }
 0x1e5   :  { %692 = vmatpush3.msra.mxu1 %v390_v21 }
 0x1e6   :  { %693 = vmatprep.subr.mxu1 %v762_v0 }
 0x202   :  { %216 = vadd.xlane.f32.xlu1 %v215_v28 }
 0x250   :  { %v234_v29 = vpop.permute.xlu1 %233 }
 0x251   :  { %v236_v30 = vsel %vm207_vm4, %v234_v29, 0.0 }
 0x252   :  { %237 = vadd.xlane.f32.xlu0 %v236_v30  ;;  %v378_v30 = vsub.s32 5, %v836_v7 }
 0x254   :  { %v379_v34 = vrot.slane %v842_v10, %v378_v30 }
 0x28b   :  { %v217_v39 = vpop.xlane.xlu1 %216 }
 0x28c   :  { %v218_v40 = vmul.f32 0.03125, %v217_v39 }
 0x28e   :  { %v219_v41 = vadd.f32 1e-05, %v218_v40 }
 0x290   :  { %725 = vrsqrt.f32 %v219_v41 }
 0x29d   :  { %v726_v46 = vpop.eup %725 }
 0x29e   :  { %v221_v50 = vmul.f32 %v726_v46, %v213_v26 }
 0x2db   :  { %v238_v42 = vpop.xlane.xlu0 %237 }
 0x2dc   :  { %v239_v43 = vmul.f32 0.03125, %v238_v42  ;;  %v398_v42 = vsub.s32 2, %v836_v7 }
 0x2de   :  { %v240_v44 = vadd.f32 1e-05, %v239_v43  ;;  %v399_v43 = vrot.slane %v842_v10, %v398_v42 }
 0x2e0   :  { %727 = vrsqrt.f32 %v240_v44 }
 0x2ed   :  { %v728_v48 = vpop.eup %727 }
 0x2ee   :  { %v242_v51 = vmul.f32 %v728_v48, %v230_v22  ;;  %v389_v22 = vld [vmem:[#allocation2 + $0x48] sm:$0xff] }
 0x2ef   :  { %694 = vmatpush3.msra.mxu1 %v389_v22  ;;  %v516_v22 = vrot.slane %v41_v18, %v204_v8 }
 0x2f0   :  { %v243_v53 = vsel %vm207_vm4, %v221_v50, %v242_v51  ;;  %695 = vmatprep.subr.mxu1 %v762_v0 }
 0x2f1   :  { %v248_v54 = vmul.f32 %v247_v49, %v243_v53  ;;  %696 = vmatpush3.msra.mxu1 %v388_v23 }
 0x2f3   :  { %v253_v55 = vadd.f32 %v252_v52, %v248_v54 }
 0x2f5   :  { %v254_v56 = vmax.f32 %v253_v55, 0.0 }
 0x2f7   :  { %679 = vmatmul.mubr.msk.f32.vlgmr.msra.gmra.mxu0 %vm267_vm5, %v254_v56 }
 0x2f8   :  { %716 = vmatprep.mubr.msk.f32.mxu0 %vm763_vm0, %v762_v0 }
 0x3b7   :  { %v337_v59 = vpop.f32.mrf.mxu0 }
 0x3b8   :  { %v338_v60 = vadd.f32 %v337_v59, %v266_v58 }
 0x3b9   :  { %v680_v61 = vpop.f32.mrf.mxu0 }
 0x3ba   :  { %355 = vrot.lane.b32.xlu0 %v338_v60, %s764_s0  ;;  %v341_v62 = vsel %vm207_vm4, %v338_v60, 0.0 }
 0x3d9   :  { %342 = vadd.xlane.f32.xlu0 %v341_v62  ;;  %v526_v62 = vld [vmem:[%s950_s5 + $0x38] sm:$0xff] }
 0x3da   :  { %701 = vmatpush3.msra.mxu0 %v526_v62 }
 0x3db   :  { %702 = vmatprep.subr.mxu0 %v762_v0 }
 0x42c   :  { %v356_v63 = vpop.permute.xlu0 %355 }
 0x42d   :  { %v358_v1 = vsel %vm207_vm4, %v356_v63, 0.0  ;;  %v525_v63 = vld [vmem:[%s950_s5 + $0x30] sm:$0xff] }
 0x42e   :  { %359 = vadd.xlane.f32.xlu1 %v358_v1  ;;  %703 = vmatpush3.msra.mxu0 %v525_v63  ;;  %v524_v1 = vld [vmem:[%s950_s5 + $0x28] sm:$0xff] }
 0x42f   :  { %704 = vmatprep.subr.mxu0 %v762_v0 }
 0x430   :  { %705 = vmatpush3.msra.mxu0 %v524_v1 }
 0x431   :  { %706 = vmatprep.subr.mxu0 %v762_v0 }
 0x462   :  { %v343_v6 = vpop.xlane.xlu0 %342 }
 0x463   :  { %v344_v9 = vmul.f32 0.03125, %v343_v6  ;;  %v519_v6 = vld [vmem:[%s950_s5] sm:$0xff] }
 0x465   :  { %v345_v11 = vsub.f32 %v338_v60, %v344_v9 }
 0x467   :  { %v346_v12 = vmul.f32 %v345_v11, %v345_v11 }
 0x469   :  { %v347_v13 = vsel %vm207_vm4, %v346_v12, 0.0 }
 0x4b7   :  { %v360_v2 = vpop.xlane.xlu1 %359 }
 0x4b8   :  { %v361_v3 = vmul.f32 0.03125, %v360_v2  ;;  %v523_v2 = vld [vmem:[%s950_s5 + $0x20] sm:$0xff] }
 0x4b9   :  { %707 = vmatpush3.msra.mxu0 %v523_v2 }
 0x4ba   :  { %v362_v4 = vsub.f32 %v338_v60, %v361_v3  ;;  %v522_v3 = vld [vmem:[%s950_s5 + $0x18] sm:$0xff]  ;;  %708 = vmatprep.subr.mxu0 %v762_v0 }
 0x4bb   :  { %709 = vmatpush3.msra.mxu0 %v522_v3 }
 0x4bc   :  { %v363_v5 = vmul.f32 %v362_v4, %v362_v4  ;;  %710 = vmatprep.subr.mxu0 %v762_v0 }
 0x4be   :  { %365 = vrot.lane.b32.xlu1 %v363_v5, %s764_s0  ;;  %v520_v5 = vld [vmem:[%s950_s5 + $0x8] sm:$0xff] }
 0x4e2   :  { %348 = vadd.xlane.f32.xlu1 %v347_v13 }
 0x530   :  { %v366_v14 = vpop.permute.xlu1 %365 }
 0x531   :  { %v368_v15 = vsel %vm207_vm4, %v366_v14, 0.0 }
 0x532   :  { %369 = vadd.xlane.f32.xlu0 %v368_v15 }
 0x56b   :  { %v349_v24 = vpop.xlane.xlu1 %348 }
 0x56c   :  { %v350_v25 = vmul.f32 0.03125, %v349_v24 }
 0x56e   :  { %v351_v26 = vadd.f32 1e-05, %v350_v25 }
 0x570   :  { %729 = vrsqrt.f32 %v351_v26 }
 0x57d   :  { %v730_v31 = vpop.eup %729 }
 0x57e   :  { %v353_v35 = vmul.f32 %v730_v31, %v345_v11 }
 0x5bb   :  { %v370_v27 = vpop.xlane.xlu0 %369 }
 0x5bc   :  { %v371_v28 = vmul.f32 0.03125, %v370_v27  ;;  %v530_v27 = vrot.slane %v41_v18, %v265_v57 }
 0x5be   :  { %v372_v29 = vadd.f32 1e-05, %v371_v28 }
 0x5c0   :  { %731 = vrsqrt.f32 %v372_v29 }
 0x5cd   :  { %v732_v33 = vpop.eup %731 }
 0x5ce   :  { %v374_v36 = vmul.f32 %v732_v33, %v362_v4  ;;  %v521_v4 = vld [vmem:[%s950_s5 + $0x10] sm:$0xff] }
 0x5cf   :  { %711 = vmatpush3.msra.mxu0 %v521_v4 }
 0x5d0   :  { %v375_v38 = vsel %vm207_vm4, %v353_v35, %v374_v36  ;;  %712 = vmatprep.subr.mxu0 %v762_v0 }
 0x5d1   :  { %v380_v39 = vmul.f32 %v379_v34, %v375_v38  ;;  %713 = vmatpush3.msra.mxu0 %v520_v5 }
 0x5d2   :  { %714 = vmatprep.subr.mxu0 %v762_v0 }
 0x5d3   :  { %v385_v40 = vadd.f32 %v384_v37, %v380_v39  ;;  %715 = vmatpush3.msra.mxu0 %v519_v6 }
 0x5d5   :  { %v386_v41 = vmax.f32 %v385_v40, 0.0 }
 0x5d7   :  { %698 = vmatmul.mubr.msk.f32.vlgmr.msra.gmra.mxu1 %vm267_vm5, %v386_v41 }
 0x697   :  { %v469_v44 = vpop.f32.mrf.mxu1 }
 0x698   :  { %v470_v45 = vadd.f32 %v469_v44, %v399_v43 }
 0x699   :  { %v699_v46 = vpop.f32.mrf.mxu1 }
 0x69a   :  { %487 = vrot.lane.b32.xlu0 %v470_v45, %s764_s0  ;;  %v473_v47 = vsel %vm207_vm4, %v470_v45, 0.0 }
 0x6b9   :  { %474 = vadd.xlane.f32.xlu0 %v473_v47 }
 0x70c   :  { %v488_v48 = vpop.permute.xlu0 %487 }
 0x70d   :  { %v490_v49 = vsel %vm207_vm4, %v488_v48, 0.0 }
 0x70e   :  { %491 = vadd.xlane.f32.xlu1 %v490_v49 }
 0x742   :  { %v475_v54 = vpop.xlane.xlu0 %474 }
 0x743   :  { %v476_v55 = vmul.f32 0.03125, %v475_v54 }
 0x745   :  { %v477_v56 = vsub.f32 %v470_v45, %v476_v55 }
 0x747   :  { %v478_v58 = vmul.f32 %v477_v56, %v477_v56 }
 0x749   :  { %v479_v59 = vsel %vm207_vm4, %v478_v58, 0.0 }
 0x797   :  { %v492_v50 = vpop.xlane.xlu1 %491 }
 0x798   :  { %v493_v51 = vmul.f32 0.03125, %v492_v50 }
 0x79a   :  { %v494_v52 = vsub.f32 %v470_v45, %v493_v51 }
 0x79c   :  { %v495_v53 = vmul.f32 %v494_v52, %v494_v52 }
 0x79e   :  { %497 = vrot.lane.b32.xlu1 %v495_v53, %s764_s0 }
 0x7c2   :  { %480 = vadd.xlane.f32.xlu1 %v479_v59 }
 0x810   :  { %v498_v60 = vpop.permute.xlu1 %497 }
 0x811   :  { %v500_v61 = vsel %vm207_vm4, %v498_v60, 0.0 }
 0x812   :  { %501 = vadd.xlane.f32.xlu0 %v500_v61 }
 0x84b   :  { %v481_v9 = vpop.xlane.xlu1 %480 }
 0x84c   :  { %v482_v11 = vmul.f32 0.03125, %v481_v9 }
 0x84e   :  { %v483_v12 = vadd.f32 1e-05, %v482_v11 }
 0x850   :  { %733 = vrsqrt.f32 %v483_v12 }
 0x85d   :  { %v734_v17 = vpop.eup %733 }
 0x85e   :  { %v485_v0 = vmul.f32 %v734_v17, %v477_v56 }
 0x89b   :  { %v502_v13 = vpop.xlane.xlu0 %501 }
 0x89c   :  { %v503_v14 = vmul.f32 0.03125, %v502_v13 }
 0x89e   :  { %v504_v15 = vadd.f32 1e-05, %v503_v14 }
 0x8a0   :  { %735 = vrsqrt.f32 %v504_v15 }
 0x8ad   :  { %v736_v19 = vpop.eup %735 }
 0x8ae   :  { %v506_v21 = vmul.f32 %v736_v19, %v494_v52 }
 0x8b0   :  { %v507_v23 = vsel %vm207_vm4, %v485_v0, %v506_v21 }
 0x8b1   :  { %v512_v24 = vmul.f32 %v511_v20, %v507_v23 }
 0x8b3   :  { %v517_v25 = vadd.f32 %v516_v22, %v512_v24 }
 0x8b5   :  { %v518_v26 = vmax.f32 %v517_v25, 0.0 }
 0x8b7   :  { %717 = vmatmul.mubr.msk.f32.vlgmr.msra.gmra.mxu0 %vm267_vm5, %v518_v26 }
 0x977   :  { %v600_v28 = vpop.f32.mrf.mxu0 }
 0x978   :  { %v601_v29 = vadd.f32 %v600_v28, %v530_v27 }
 0x979   :  { %v718_v30 = vpop.f32.mrf.mxu0 }
 0x97a   :  { %605 = vst.msk [vmem:[%s952_s7] sm:$0xff] %vm604_vm6, %v601_v29 }
 0x97b   :  { %610 = vsyncpa [#allocation3], 1 }

</bundles_post_ra>
